<compile_context>
chip_gen: v7x
topology: tpu7x:2x2x1
jax: 0.10.0
libtpu: 0.0.40
codegen_flags: <defaults>
</compile_context>

<pallas_src>
import functools

import jax
import jax.numpy as jnp
from jax import lax
from jax.experimental import pallas as pl
from jax.experimental.pallas import tpu as pltpu


def _round_up(x, m):
    return ((x + m - 1) // m) * m


# --------------------------------------------------------------------------- #
# Parameter init (shapes exactly as the PyTorch module's __init__)            #
# --------------------------------------------------------------------------- #
def init_params(key, desire_dim=32, hidden_dim=32):
    D, H = desire_dim, hidden_dim
    ks = jax.random.split(key, 16)
    p = {}
    p["semantic_table"] = 0.02 * jax.random.normal(ks[0], (1000, D // 4), jnp.float32)
    p["trait_table"]    = 0.02 * jax.random.normal(ks[1], (100, D // 4), jnp.float32)
    p["state_table"]    = 0.02 * jax.random.normal(ks[2], (5, D // 8), jnp.float32)

    # nn.Linear(1, D//8) x3  (stored as (in=1, out=D//8) so y = x @ W + b)
    p["strength_w"]      = 0.5 * jax.random.normal(ks[3], (1, D // 8), jnp.float32)
    p["strength_b"]      = 0.1 * jax.random.normal(ks[4], (D // 8,), jnp.float32)
    p["reinforcement_w"] = 0.5 * jax.random.normal(ks[5], (1, D // 8), jnp.float32)
    p["reinforcement_b"] = 0.1 * jax.random.normal(ks[6], (D // 8,), jnp.float32)
    p["goal_w"]          = 0.5 * jax.random.normal(ks[7], (1, D // 8), jnp.float32)
    p["goal_b"]          = 0.1 * jax.random.normal(ks[8], (D // 8,), jnp.float32)

    # fusion_network: Linear(D, H) -> ReLU -> Dropout -> Linear(H, D) -> LayerNorm(D)
    total = D // 4 + 3 * (D // 8) + D // 4 + D // 8   # == D
    p["w1"]    = jax.random.normal(ks[9], (total, H), jnp.float32) / jnp.sqrt(float(total))
    p["b1"]    = 0.1 * jax.random.normal(ks[10], (H,), jnp.float32)
    p["w2"]    = jax.random.normal(ks[11], (H, D), jnp.float32) / jnp.sqrt(float(H))
    p["b2"]    = 0.1 * jax.random.normal(ks[12], (D,), jnp.float32)
    p["gamma"] = jnp.ones((D,), jnp.float32)
    p["beta"]  = jnp.zeros((D,), jnp.float32)
    return p


# --------------------------------------------------------------------------- #
# Host-side (one-time) folding of the module into fused-kernel operands       #
# --------------------------------------------------------------------------- #
def prepare_fused_params(p, desire_dim=32, hidden_dim=32):
    """Fold the whole first layer (gathers + scalar Linears + b1) into one
    lane-dense transposed "projection table", and pack W2/b2/gamma/beta into
    one lane-dense constant."""
    D, H = desire_dim, hidden_dim
    assert D <= 128 and H <= 128, "single-tile lane layout assumed"
    Dq, De = D // 4, D // 8

    # W1 row segments matching the original concat order:
    #   [sem | strength | reinforcement | goal | trait | state]
    o = 0
    w1_sem = p["w1"][o:o + Dq]; o += Dq
    w1_str = p["w1"][o:o + De]; o += De
    w1_rei = p["w1"][o:o + De]; o += De
    w1_goa = p["w1"][o:o + De]; o += De
    w1_tra = p["w1"][o:o + Dq]; o += Dq
    w1_sta = p["w1"][o:o + De]; o += De
    assert o == D

    # Fold the Linear(1, De) biases through W1 into an effective b1.
    b1_eff = (p["b1"]
              + p["strength_b"] @ w1_str
              + p["reinforcement_b"] @ w1_rei
              + p["goal_b"] @ w1_goa)                                   # (H,)

    n_sem = p["semantic_table"].shape[0]     # 1000
    n_tra = p["trait_table"].shape[0]        # 100
    n_sta = p["state_table"].shape[0]        # 5
    R_GATHER = n_sem + n_tra + n_sta         # 1105
    N_SCAL = 4                               # strength, reinforcement, goal, const-1 (b1)
    R2 = _round_up(R_GATHER + N_SCAL, 128)   # 1152  (lane-dense contraction dim)
    H_pad = _round_up(H, 8)

    # Transposed projection table: column r holds the H-vector contributed to
    # h = x @ W1 + b1 when the multi-hot / value matrix has weight 1 (or the
    # scalar value) in column r.  Last dim is a multiple of 128 -> dense DMA.
    tblT = jnp.zeros((H_pad, R2), jnp.float32)
    tblT = tblT.at[:H, 0:n_sem].set((p["semantic_table"] @ w1_sem).T)
    tblT = tblT.at[:H, n_sem:n_sem + n_tra].set((p["trait_table"] @ w1_tra).T)
    tblT = tblT.at[:H, n_sem + n_tra:R_GATHER].set((p["state_table"] @ w1_sta).T)
    tblT = tblT.at[:H, R_GATHER + 0].set((p["strength_w"] @ w1_str)[0])
    tblT = tblT.at[:H, R_GATHER + 1].set((p["reinforcement_w"] @ w1_rei)[0])
    tblT = tblT.at[:H, R_GATHER + 2].set((p["goal_w"] @ w1_goa)[0])
    tblT = tblT.at[:H, R_GATHER + 3].set(b1_eff)

    # One packed lane-dense constant for the second Linear + LayerNorm:
    #   rows 0:H        lanes 0:D -> W2
    #   row  H_pad + 0  lanes 0:D -> b2
    #   row  H_pad + 1  lanes 0:D -> gamma
    #   row  H_pad + 2  lanes 0:D -> beta
    wconst = jnp.zeros((H_pad + 8, 128), jnp.float32)
    wconst = wconst.at[:H, :D].set(p["w2"])
    wconst = wconst.at[H_pad + 0, :D].set(p["b2"])
    wconst = wconst.at[H_pad + 1, :D].set(p["gamma"])
    wconst = wconst.at[H_pad + 2, :D].set(p["beta"])

    return dict(tblT=tblT, wconst=wconst, D=D, H=H, H_pad=H_pad,
                R2=R2, R_GATHER=R_GATHER,
                trait_off=int(n_sem), state_off=int(n_sem + n_tra))


# --------------------------------------------------------------------------- #
# Fused Pallas kernel: multi-hot gather-matmul + ReLU + Linear + LayerNorm    #
# --------------------------------------------------------------------------- #
def _build_fused_kernel(n_pad, D, H_pad, R2, R_GATHER):
    def kernel(data_ref, tbl_ref, wconst_ref, o_ref):
        data = data_ref[...]                                   # (n_pad, 8) f32
        lane = lax.broadcasted_iota(jnp.int32, (n_pad, R2), 1)

        # Multi-hot over the combined (sem | trait | state) row range.  The three
        # index ranges are disjoint, so one matrix picks all three rows at once.
        # (Indices are stored exactly in f32; values < 2^24.)  An out-of-range
        # index matches no lane and simply contributes zeros (no OOB reads).
        i_sem = data[:, 0:1].astype(jnp.int32)
        i_tra = data[:, 1:2].astype(jnp.int32)
        i_sta = data[:, 2:3].astype(jnp.int32)
        mh = ((lane == i_sem) | (lane == i_tra) | (lane == i_sta)).astype(jnp.float32)

        # Value columns R_GATHER..R_GATHER+3 carry strength, reinforcement_count,
        # goal_potential and a constant 1.0 (which picks up the folded b1).
        for s in range(4):
            mh = mh + jnp.where(lane == R_GATHER + s, data[:, 3 + s:4 + s], 0.0)

        # h = x @ W1 + b1, with embedding gathers and the scalar Linear(1, D/8)
        # projections folded into the transposed table (rhs-transposed matmul).
        h = lax.dot_general(mh, tbl_ref[...],
                            dimension_numbers=(((1,), (1,)), ((), ())),
                            preferred_element_type=jnp.float32)   # (n_pad, H_pad)
        h = jnp.maximum(h, 0.0)     # ReLU; Dropout(0.1) is identity in eval mode.

        w2    = wconst_ref[0:H_pad, 0:D]
        b2    = wconst_ref[H_pad + 0:H_pad + 1, 0:D]
        gamma = wconst_ref[H_pad + 1:H_pad + 2, 0:D]
        beta  = wconst_ref[H_pad + 2:H_pad + 3, 0:D]

        # Linear(H, D); rows H..H_pad of h / w2 are zero so padding is harmless.
        y = jnp.dot(h, w2, preferred_element_type=jnp.float32) + b2
        # LayerNorm over last dim (eps = 1e-5, PyTorch default), kept in f32.
        mean = jnp.mean(y, axis=-1, keepdims=True)
        var = jnp.mean((y - mean) ** 2, axis=-1, keepdims=True)
        o_ref[...] = (y - mean) * lax.rsqrt(var + 1e-5) * gamma + beta

    return kernel


def desire_embedding_forward(fp, name_idx, trait_idx, state_idx,
                             strength, reinforcement, goal_potential):
    """Fused forward: returns (N, D) desire embeddings."""
    D, H_pad, R2, R_GATHER = fp["D"], fp["H_pad"], fp["R2"], fp["R_GATHER"]
    N = int(name_idx.shape[0])
    n_pad = max(8, _round_up(N, 8))                    # sublane-align rows

    # Single tiny packed input:
    #   cols 0:3  combined-table row indices (exact in f32)
    #   cols 3:6  strength, reinforcement_count, goal_potential
    #   col  6    1.0 (selects the folded b1 column)
    data = jnp.zeros((n_pad, 8), jnp.float32)
    data = data.at[:N, 0].set(name_idx.astype(jnp.float32))
    data = data.at[:N, 1].set(trait_idx.astype(jnp.float32) + fp["trait_off"])
    data = data.at[:N, 2].set(state_idx.astype(jnp.float32) + fp["state_off"])
    data = data.at[:N, 3].set(strength.astype(jnp.float32))
    data = data.at[:N, 4].set(reinforcement.astype(jnp.float32))
    data = data.at[:N, 5].set(goal_potential.astype(jnp.float32))
    data = data.at[:N, 6].set(1.0)
    # Padded rows (N..n_pad) gather row 0 with zero scalars -> garbage rows that
    # are sliced off below.

    flops = 2 * n_pad * R2 * H_pad + 2 * n_pad * H_pad * D + 10 * n_pad * D
    bytes_accessed = 4 * (data.size + fp["tblT"].size + fp["wconst"].size + n_pad * D)

    out = pl.pallas_call(
        _build_fused_kernel(n_pad, D, H_pad, R2, R_GATHER),
        out_shape=jax.ShapeDtypeStruct((n_pad, D), jnp.float32),
        in_specs=[
            pl.BlockSpec(memory_space=pltpu.MemorySpace.VMEM),   # packed indices+scalars
            pl.BlockSpec(memory_space=pltpu.MemorySpace.VMEM),   # lane-dense projection table
            pl.BlockSpec(memory_space=pltpu.MemorySpace.VMEM),   # packed W2/b2/gamma/beta
        ],
        out_specs=pl.BlockSpec(memory_space=pltpu.MemorySpace.VMEM),
        cost_estimate=pl.CostEstimate(flops=flops, transcendentals=n_pad,
                                      bytes_accessed=bytes_accessed),
    )(data, fp["tblT"], fp["wconst"])
    return out[:N]


# --------------------------------------------------------------------------- #
# Pure-JAX reference of the ORIGINAL (unfolded) module forward                #
# --------------------------------------------------------------------------- #
def reference_forward(p, name_idx, trait_idx, state_idx,
                      strength, reinforcement, goal_potential):
    sem   = jnp.take(p["semantic_table"], name_idx, axis=0)
    trait = jnp.take(p["trait_table"], trait_idx, axis=0)
    state = jnp.take(p["state_table"], state_idx, axis=0)
    s_emb = strength[:, None] * p["strength_w"] + p["strength_b"]
    r_emb = reinforcement[:, None] * p["reinforcement_w"] + p["reinforcement_b"]
    g_emb = goal_potential[:, None] * p["goal_w"] + p["goal_b"]
    x = jnp.concatenate([sem, s_emb, r_emb, g_emb, trait, state], axis=-1)
    h = jnp.maximum(x @ p["w1"] + p["b1"], 0.0)
    y = h @ p["w2"] + p["b2"]
    mean = jnp.mean(y, axis=-1, keepdims=True)
    var = jnp.mean((y - mean) ** 2, axis=-1, keepdims=True)
    return (y - mean) / jnp.sqrt(var + 1e-5) * p["gamma"] + p["beta"]


# --------------------------------------------------------------------------- #
if __name__ == "__main__":
    DESIRE_DIM = 32
    HIDDEN_DIM = 32
    N = 8  # number of desires in the list

    key = jax.random.PRNGKey(0)
    pkey, dkey = jax.random.split(key)
    params = init_params(pkey, DESIRE_DIM, HIDDEN_DIM)
    fused = prepare_fused_params(params, DESIRE_DIM, HIDDEN_DIM)

    # Synthetic "desires": deterministic name/trait hashes + state + scalars
    # (the Python-side `hash(name) % 1000` of the original module is host glue).
    names = [f"desire_{i}" for i in range(N)]
    traits = [f"trait_{i % 3}" for i in range(N)]
    name_idx = jnp.array([sum(ord(c) for c in n) % 1000 for n in names], jnp.int32)
    trait_idx = jnp.array([sum(ord(c) for c in t) % 100 for t in traits], jnp.int32)
    state_idx = jnp.array([i % 5 for i in range(N)], jnp.int32)

    k1, k2, k3 = jax.random.split(dkey, 3)
    strength = jax.random.uniform(k1, (N,), jnp.float32)
    reinforcement = jax.random.randint(k2, (N,), 0, 10).astype(jnp.float32)
    goal_potential = jax.random.uniform(k3, (N,), jnp.float32)

    fwd = jax.jit(functools.partial(desire_embedding_forward, fused))
    out = jax.block_until_ready(fwd(name_idx, trait_idx, state_idx,
                                    strength, reinforcement, goal_potential))
    assert out.shape == (N, DESIRE_DIM) and out.dtype == jnp.float32

    ref = reference_forward(params, name_idx, trait_idx, state_idx,
                            strength, reinforcement, goal_potential)
    err = float(jnp.max(jnp.abs(out - ref)))
    assert err < 2e-4, err

    print("KERNEL_OK")
</pallas_src>

<mosaic_0001>
module attributes {stable_mosaic.version = 11 : i64} {
  func.func @kernel(%arg0: memref<8x8xf32, #tpu.memory_space<vmem>>, %arg1: memref<32x1152xf32, #tpu.memory_space<vmem>>, %arg2: memref<40x128xf32, #tpu.memory_space<vmem>>, %arg3: memref<8x32xf32, #tpu.memory_space<vmem>>) attributes {dimension_semantics = [], scalar_prefetch = 0 : i64, scratch_operands = 0 : i64, tpu.core_type = #tpu.core_type<tc>} {
    %c0 = arith.constant 0 : index
    %c0_0 = arith.constant 0 : index
    %0 = vector.load %arg0[%c0, %c0_0] : memref<8x8xf32, #tpu.memory_space<vmem>>, vector<8x8xf32>
    %1 = tpu.iota {dimensions = array<i32: 1>} : vector<8x1152xi32>
    %2 = vector.extract_strided_slice %0 {offsets = [0, 0], sizes = [8, 1], strides = [1, 1]} : vector<8x8xf32> to vector<8x1xf32>
    %3 = arith.fptosi %2 : vector<8x1xf32> to vector<8x1xi32>
    %4 = vector.extract_strided_slice %0 {offsets = [0, 1], sizes = [8, 1], strides = [1, 1]} : vector<8x8xf32> to vector<8x1xf32>
    %5 = arith.fptosi %4 : vector<8x1xf32> to vector<8x1xi32>
    %6 = vector.extract_strided_slice %0 {offsets = [0, 2], sizes = [8, 1], strides = [1, 1]} : vector<8x8xf32> to vector<8x1xf32>
    %7 = arith.fptosi %6 : vector<8x1xf32> to vector<8x1xi32>
    %8 = vector.broadcast %3 : vector<8x1xi32> to vector<8x1152xi32>
    %9 = arith.cmpi eq, %1, %8 : vector<8x1152xi32>
    %10 = vector.broadcast %5 : vector<8x1xi32> to vector<8x1152xi32>
    %11 = arith.cmpi eq, %1, %10 : vector<8x1152xi32>
    %12 = arith.ori %9, %11 : vector<8x1152xi1>
    %13 = vector.broadcast %7 : vector<8x1xi32> to vector<8x1152xi32>
    %14 = arith.cmpi eq, %1, %13 : vector<8x1152xi32>
    %15 = arith.ori %12, %14 : vector<8x1152xi1>
    %16 = arith.extui %15 : vector<8x1152xi1> to vector<8x1152xi32>
    %17 = arith.sitofp %16 : vector<8x1152xi32> to vector<8x1152xf32>
    %c1105_i32 = arith.constant 1105 : i32
    %18 = vector.broadcast %c1105_i32 : i32 to vector<8x1152xi32>
    %19 = arith.cmpi eq, %1, %18 : vector<8x1152xi32>
    %20 = vector.extract_strided_slice %0 {offsets = [0, 3], sizes = [8, 1], strides = [1, 1]} : vector<8x8xf32> to vector<8x1xf32>
    %cst = arith.constant 0.000000e+00 : f32
    %21 = vector.shape_cast %20 : vector<8x1xf32> to vector<8x1xf32>
    %22 = vector.broadcast %21 : vector<8x1xf32> to vector<8x1152xf32>
    %23 = vector.broadcast %cst : f32 to vector<8x1152xf32>
    %24 = arith.select %19, %22, %23 : vector<8x1152xi1>, vector<8x1152xf32>
    %25 = arith.addf %17, %24 : vector<8x1152xf32>
    %c1106_i32 = arith.constant 1106 : i32
    %26 = vector.broadcast %c1106_i32 : i32 to vector<8x1152xi32>
    %27 = arith.cmpi eq, %1, %26 : vector<8x1152xi32>
    %28 = vector.extract_strided_slice %0 {offsets = [0, 4], sizes = [8, 1], strides = [1, 1]} : vector<8x8xf32> to vector<8x1xf32>
    %cst_1 = arith.constant 0.000000e+00 : f32
    %29 = vector.shape_cast %28 : vector<8x1xf32> to vector<8x1xf32>
    %30 = vector.broadcast %29 : vector<8x1xf32> to vector<8x1152xf32>
    %31 = vector.broadcast %cst_1 : f32 to vector<8x1152xf32>
    %32 = arith.select %27, %30, %31 : vector<8x1152xi1>, vector<8x1152xf32>
    %33 = arith.addf %25, %32 : vector<8x1152xf32>
    %c1107_i32 = arith.constant 1107 : i32
    %34 = vector.broadcast %c1107_i32 : i32 to vector<8x1152xi32>
    %35 = arith.cmpi eq, %1, %34 : vector<8x1152xi32>
    %36 = vector.extract_strided_slice %0 {offsets = [0, 5], sizes = [8, 1], strides = [1, 1]} : vector<8x8xf32> to vector<8x1xf32>
    %cst_2 = arith.constant 0.000000e+00 : f32
    %37 = vector.shape_cast %36 : vector<8x1xf32> to vector<8x1xf32>
    %38 = vector.broadcast %37 : vector<8x1xf32> to vector<8x1152xf32>
    %39 = vector.broadcast %cst_2 : f32 to vector<8x1152xf32>
    %40 = arith.select %35, %38, %39 : vector<8x1152xi1>, vector<8x1152xf32>
    %41 = arith.addf %33, %40 : vector<8x1152xf32>
    %c1108_i32 = arith.constant 1108 : i32
    %42 = vector.broadcast %c1108_i32 : i32 to vector<8x1152xi32>
    %43 = arith.cmpi eq, %1, %42 : vector<8x1152xi32>
    %44 = vector.extract_strided_slice %0 {offsets = [0, 6], sizes = [8, 1], strides = [1, 1]} : vector<8x8xf32> to vector<8x1xf32>
    %cst_3 = arith.constant 0.000000e+00 : f32
    %45 = vector.shape_cast %44 : vector<8x1xf32> to vector<8x1xf32>
    %46 = vector.broadcast %45 : vector<8x1xf32> to vector<8x1152xf32>
    %47 = vector.broadcast %cst_3 : f32 to vector<8x1152xf32>
    %48 = arith.select %43, %46, %47 : vector<8x1152xi1>, vector<8x1152xf32>
    %49 = arith.addf %41, %48 : vector<8x1152xf32>
    %c0_4 = arith.constant 0 : index
    %c0_5 = arith.constant 0 : index
    %50 = vector.load %arg1[%c0_4, %c0_5] : memref<32x1152xf32, #tpu.memory_space<vmem>>, vector<32x1152xf32>
    %cst_6 = arith.constant dense<0.000000e+00> : vector<8x32xf32>
    %51 = tpu.matmul %49, %50, %cst_6 {dimension_numbers = #tpu.dot_dimension_numbers<[1], [1], [0], [0], [0, 0, 1, 0], [], []>} : vector<8x1152xf32>, vector<32x1152xf32>, vector<8x32xf32> -> vector<8x32xf32>
    %cst_7 = arith.constant 0.000000e+00 : f32
    %52 = vector.broadcast %cst_7 : f32 to vector<8x32xf32>
    %53 = arith.maximumf %51, %52 : vector<8x32xf32>
    %c0_8 = arith.constant 0 : index
    %c0_9 = arith.constant 0 : index
    %54 = vector.load %arg2[%c0_8, %c0_9] : memref<40x128xf32, #tpu.memory_space<vmem>>, vector<32x32xf32>
    %c32 = arith.constant 32 : index
    %c0_10 = arith.constant 0 : index
    %55 = vector.load %arg2[%c32, %c0_10] : memref<40x128xf32, #tpu.memory_space<vmem>>, vector<1x32xf32>
    %c33 = arith.constant 33 : index
    %c0_11 = arith.constant 0 : index
    %56 = vector.load %arg2[%c33, %c0_11] : memref<40x128xf32, #tpu.memory_space<vmem>>, vector<1x32xf32>
    %c34 = arith.constant 34 : index
    %c0_12 = arith.constant 0 : index
    %57 = vector.load %arg2[%c34, %c0_12] : memref<40x128xf32, #tpu.memory_space<vmem>>, vector<1x32xf32>
    %cst_13 = arith.constant dense<0.000000e+00> : vector<8x32xf32>
    %58 = tpu.matmul %53, %54, %cst_13 {dimension_numbers = #tpu.dot_dimension_numbers<[1], [0], [0], [1], [0, 0, 1, 1], [], []>} : vector<8x32xf32>, vector<32x32xf32>, vector<8x32xf32> -> vector<8x32xf32>
    %59 = vector.broadcast %55 : vector<1x32xf32> to vector<8x32xf32>
    %60 = arith.addf %58, %59 : vector<8x32xf32>
    %cst_14 = arith.constant dense<0.000000e+00> : vector<8xf32>
    %61 = vector.multi_reduction <add>, %60, %cst_14 [1] : vector<8x32xf32> to vector<8xf32>
    %62 = vector.shape_cast %61 : vector<8xf32> to vector<8x1xf32>
    %cst_15 = arith.constant 3.200000e+01 : f32
    %63 = vector.broadcast %cst_15 : f32 to vector<8x1xf32>
    %64 = arith.divf %62, %63 : vector<8x1xf32>
    %65 = vector.broadcast %64 : vector<8x1xf32> to vector<8x32xf32>
    %66 = arith.subf %60, %65 : vector<8x32xf32>
    %67 = arith.mulf %66, %66 : vector<8x32xf32>
    %cst_16 = arith.constant dense<0.000000e+00> : vector<8xf32>
    %68 = vector.multi_reduction <add>, %67, %cst_16 [1] : vector<8x32xf32> to vector<8xf32>
    %69 = vector.shape_cast %68 : vector<8xf32> to vector<8x1xf32>
    %cst_17 = arith.constant 3.200000e+01 : f32
    %70 = vector.broadcast %cst_17 : f32 to vector<8x1xf32>
    %71 = arith.divf %69, %70 : vector<8x1xf32>
    %72 = vector.broadcast %64 : vector<8x1xf32> to vector<8x32xf32>
    %73 = arith.subf %60, %72 : vector<8x32xf32>
    %cst_18 = arith.constant 9.99999974E-6 : f32
    %74 = vector.broadcast %cst_18 : f32 to vector<8x1xf32>
    %75 = arith.addf %71, %74 : vector<8x1xf32>
    %76 = math.rsqrt %75 : vector<8x1xf32>
    %77 = vector.broadcast %76 : vector<8x1xf32> to vector<8x32xf32>
    %78 = arith.mulf %73, %77 : vector<8x32xf32>
    %79 = vector.broadcast %56 : vector<1x32xf32> to vector<8x32xf32>
    %80 = arith.mulf %78, %79 : vector<8x32xf32>
    %81 = vector.broadcast %57 : vector<1x32xf32> to vector<8x32xf32>
    %82 = arith.addf %80, %81 : vector<8x32xf32>
    %c0_19 = arith.constant 0 : index
    %c0_20 = arith.constant 0 : index
    %83 = vector.load %arg3[%c0_19, %c0_20] : memref<8x32xf32, #tpu.memory_space<vmem>>, vector<8x32xf32>
    tpu.vector_store %arg3[%c0_19, %c0_20], %82 {strides = array<i32>} : memref<8x32xf32, #tpu.memory_space<vmem>>, vector<8x32xf32>,
    return
  }
}

</mosaic_0001>

<bundles_post_ra>
// kernel: desire_embedding_forward.1
= control target key start
LH: loop header
LB: loop body
LE: loop exit
PB: predicated region body
PF: predicated region fallthrough
CT: control target
= control target key end

     0   :  { %v887_v2 = vmov 2   ;;  %v888_v3 = vmov 0   ;;  %s1133_s0 = inlined_call_operand.vmem [shape: f32[8,8], index: 0, kind: input, shape index: {}]   ;;  %s1134_s1 = inlined_call_operand.vmem [shape: f32[32,1152], index: 1, kind: input, shape index: {}]   ;;  %s1135_s2 = inlined_call_operand.vmem [shape: f32[40,128], index: 2, kind: input, shape index: {}]   ;;  %s1136_s3 = inlined_call_operand.hbm [shape: f32[8,32], index: 3, kind: output, shape index: {}]  }
   0x1   :  { %v922_v0 = vld [vmem:[%s1133_s0] sm:$0xff]  ;;  %v225_v1 = vld [vmem:[%s1134_s1 + $0x8] sm:$0xff]  ;;  %855 = vset.pattern.permute.xlu1 %v887_v2  ;;  %853 = vset.pattern.permute.xlu0 %v888_v3  ;;  %v234_v5 = vld [vmem:[%s1134_s1 + $0x50] sm:$0xff] }
   0x2   :  { %v839_v4 = vtrunc.f32 %v922_v0  ;;  %v229_v6 = vld [vmem:[%s1134_s1 + $0x28] sm:$0xff]  ;;  %v238_v7 = vld [vmem:[%s1134_s1 + $0x70] sm:$0xff]  ;;  %v788_v8 = vpack.c.bf16 %v234_v5, %v225_v1  ;;  %v224_v10 = vld [vmem:[%s1134_s1] sm:$0xff] }
   0x3   :  { %v804_v9 = vpack.c.bf16 %v238_v7, %v229_v6  ;;  %v233_v11 = vld [vmem:[%s1134_s1 + $0x48] sm:$0xff]  ;;  %v228_v12 = vld [vmem:[%s1134_s1 + $0x20] sm:$0xff]  ;;  %v243_v16 = vld [vmem:[%s1134_s1 + $0x98] sm:$0xff] }
   0x4   :  { %v840_v13 = vcvt.f32.s32 %v839_v4  ;;  %v790_v14 = vpack.c.bf16 %v233_v11, %v224_v10  ;;  %v237_v15 = vld [vmem:[%s1134_s1 + $0x68] sm:$0xff]  ;;  %v252_v17 = vld [vmem:[%s1134_s1 + $0xe0] sm:$0xff]  ;;  %789 = vmatprep.subr.bf16.mxu1 %v788_v8  ;;  %v247_v20 = vld [vmem:[%s1134_s1 + $0xb8] sm:$0xff] }
   0x5   :  { %805 = vmatprep.subr.bf16.mxu0 %v804_v9  ;;  %v806_v18 = vpack.c.bf16 %v237_v15, %v228_v12  ;;  %v792_v19 = vpack.c.bf16 %v252_v17, %v243_v16  ;;  %v256_v21 = vld [vmem:[%s1134_s1 + $0x100] sm:$0xff] }
   0x6   :  { %61 = vperm.xlu1 %855, %v840_v13   ;;  %28 = vperm.xlu0 %853, %v840_v13   ;;  %v808_v22 = vpack.c.bf16 %v256_v21, %v247_v20 }
   0x7   :  { %791 = vmatpush1.bf16.xpose.msra.mxu1 %v790_v14  ;;  %807 = vmatpush1.bf16.xpose.msra.mxu0 %v806_v18 }
   0x8   :  { %8 = vsyncpa [#allocation3], 0  ;;  %793 = vmatprep.subr.bf16.mxu1 %v792_v19  ;;  %809 = vmatprep.subr.bf16.mxu0 %v808_v22  ;;  %v242_v23 = vld [vmem:[%s1134_s1 + $0x90] sm:$0xff]  ;;  %v889_v24 = vmov 3   ;;  %v890_v25 = vmov 1   ;;  %v251_v26 = vld [vmem:[%s1134_s1 + $0xd8] sm:$0xff]  ;;  %v16_v40 = vlaneseq }
   0x9   :  { %v246_v27 = vld [vmem:[%s1134_s1 + $0xb0] sm:$0xff]  ;;  %v255_v28 = vld [vmem:[%s1134_s1 + $0xf8] sm:$0xff]  ;;  %v794_v29 = vpack.c.bf16 %v251_v26, %v242_v23  ;;  %v236_v32 = vld [vmem:[%s1134_s1 + $0x60] sm:$0xff]  ;;  %v891_v34 = vmov 4   ;;  %v892_v35 = vmov 5   ;;  %v893_v39 = vmov 6  }
   0xa   :  { %856 = vset.pattern.permute.xlu1 %v889_v24  ;;  %854 = vset.pattern.permute.xlu0 %v890_v25  ;;  %v810_v30 = vpack.c.bf16 %v255_v28, %v246_v27  ;;  %v227_v31 = vld [vmem:[%s1134_s1 + $0x18] sm:$0xff]  ;;  %v240_v37 = vld [vmem:[%s1134_s1 + $0x80] sm:$0xff]  ;;  %v991_v42 = vand.u32 127, %v16_v40  ;;  %v226_v47 = vld [vmem:[%s1134_s1 + $0x10] sm:$0xff]  ;;  %v894_v52 = vmov 1.0   ;;  %v895_v8 = vmov 0.0|0.0  }
   0xb   :  { %110 = vperm.xlu1 %856, %v922_v0   ;;  %40 = vperm.xlu0 %854, %v840_v13   ;;  %v796_v33 = vpack.c.bf16 %v236_v32, %v227_v31  ;;  %v231_v36 = vld [vmem:[%s1134_s1 + $0x38] sm:$0xff]  ;;  %v245_v50 = vld [vmem:[%s1134_s1 + $0xa8] sm:$0xff]  ;;  %v254_v51 = vld [vmem:[%s1134_s1 + $0xf0] sm:$0xff]  ;;  %v896_v13 = vmov 0.0   ;;  %s898_s15 = smov [#allocation2]  }
   0xc   :  { %v812_v38 = vpack.c.bf16 %v240_v37, %v231_v36  ;;  %v18_v43 = vadd.s32 128, %v991_v42  ;;  %v22_v46 = vadd.s32 640, %v991_v42  ;;  %v235_v48 = vld [vmem:[%s1134_s1 + $0x58] sm:$0xff]  ;;  %v21_v49 = vadd.s32 512, %v991_v42  ;;  %v230_v53 = vld [vmem:[%s1134_s1 + $0x30] sm:$0xff]  ;;  %v249_v57 = vld [vmem:[%s1134_s1 + $0xc8] sm:$0xff] }
   0xd   :  { %v239_v54 = vld [vmem:[%s1134_s1 + $0x78] sm:$0xff]  ;;  %v798_v55 = vpack.c.bf16 %v235_v48, %v226_v47  ;;  %v20_v56 = vadd.s32 384, %v991_v42  ;;  %v258_v58 = vld [vmem:[%s1134_s1 + $0x110] sm:$0xff]  ;;  %v800_v59 = vpack.c.bf16 %v254_v51, %v245_v50  ;;  %v24_v61 = vadd.s32 896, %v991_v42  ;;  %v244_v63 = vld [vmem:[%s1134_s1 + $0xa0] sm:$0xff]  ;;  %s727_s16 = sshll.u32 %s898_s15, 4  ;;  %s728_s16 = int_to_ptr.vmem [resolvable:$true] %s727_s16 }
   0xe   :  { %v814_v60 = vpack.c.bf16 %v239_v54, %v230_v53  ;;  %v816_v62 = vpack.c.bf16 %v258_v58, %v249_v57  ;;  %v248_v1 = vld [vmem:[%s1134_s1 + $0xc0] sm:$0xff]  ;;  %v257_v2 = vld [vmem:[%s1134_s1 + $0x108] sm:$0xff]  ;;  %v25_v3 = vadd.s32 1024, %v991_v42  ;;  %v19_v6 = vadd.s32 256, %v991_v42  ;;  %v250_v18 = vld [vmem:[%s1134_s1 + $0xd0] sm:$0xff]  ;;  %s863_s17 = scalar_lea.vmem %s728_s16, 128  ;;  %p868_p1 = scmp.lt.s32.totalorder %s728_s16, %s728_s16 }
   0xf   :  { %857 = vset.pattern.permute.xlu1 %v891_v34  ;;  %858 = vset.pattern.permute.xlu0 %v892_v35  ;;  %v818_v5 = vpack.c.bf16 %v257_v2, %v248_v1  ;;  %v23_v7 = vadd.s32 768, %v991_v42  ;;  %v232_v10 = vld [vmem:[%s1134_s1 + $0x40] sm:$0xff]  ;;  %v241_v11 = vld [vmem:[%s1134_s1 + $0x88] sm:$0xff]  ;;  %v259_v19 = vld [vmem:[%s1134_s1 + $0x118] sm:$0xff]  ;;  %p864_p0 = scmp.ne.s32.totalorder %s728_s16, %s863_s17  ;;  %p869_p2 = scmp.lt.s32.totalorder %s863_s17, %s863_s17 }
  0x10   :  { %141 = vperm.xlu1 %857, %v922_v0   ;;  %172 = vperm.xlu0 %858, %v922_v0   ;;  %v821_v12 = vpack.c.bf16 %v241_v11, %v232_v10  ;;  %v824_v22 = vpack.c.bf16 %v259_v19, %v250_v18  ;;  %v613_v32 = vld [vmem:[%s1135_s2 + $0x10] sm:$0xff]  ;;  %v755_v57 = vld [vmem:[%s1135_s2 + $0x22] ss:$0 sm:$0xff] }
  0x11   :  { %795 = vmatpush1.bf16.xpose.msra.mxu1 %v794_v29  ;;  %811 = vmatpush1.bf16.xpose.msra.mxu0 %v810_v30  ;;  %v611_v29 = vld [vmem:[%s1135_s2] sm:$0xff]  ;;  %v612_v30 = vld [vmem:[%s1135_s2 + $0x8] sm:$0xff]  ;;  %p870_p3 = por %p869_p2, %p868_p1 }
  0x12   :  { %797 = vmatprep.subr.bf16.mxu1 %v796_v33  ;;  %813 = vmatprep.subr.bf16.mxu0 %v812_v38  ;;  %v827_v31 = vpack.c.bf16 %v612_v30, %v611_v29  ;;  %v614_v33 = vld [vmem:[%s1135_s2 + $0x18] sm:$0xff] }
  0x13   :  { %v830_v34 = vpack.c.bf16 %v614_v33, %v613_v32  ;;  %p871_p4 = pnand %p870_p3, %p864_p0 }
  0x14   :  { %859 = vset.pattern.permute.xlu1 %v893_v39  ;;  %860 = vset.pattern.permute.xlu0 %v893_v39 }
  0x15   :  { %203 = vperm.xlu1 %859, %v922_v0   ;;  %v253_v0 = vld [vmem:[%s1134_s1 + $0xe8] sm:$0xff] }
  0x16   :  { %v802_v4 = vpack.c.bf16 %v253_v0, %v244_v63 }
  0x85   :  { %v989_v41 = vpop.permute.xlu0 %28  ;;  %v996_v45 = vpop.permute.xlu1 %61 }
  0x86   :  { %vm64_vm1 = vcmp.eq.s32.totalorder %v18_v43, %v996_v45  ;;  %vm31_vm2 = vcmp.eq.s32.totalorder %v18_v43, %v989_v41  ;;  %vm68_vm5 = vcmp.eq.s32.totalorder %v22_v46, %v996_v45  ;;  %vm35_vm7 = vcmp.eq.s32.totalorder %v22_v46, %v989_v41 }
  0x87   :  { %vm63_vm10 = vcmp.eq.s32.totalorder %v991_v42, %v996_v45  ;;  %vm30_vm12 = vcmp.eq.s32.totalorder %v991_v42, %v989_v41  ;;  %vm67_vm15 = vcmp.eq.s32.totalorder %v21_v49, %v996_v45 }
  0x8a   :  { %v994_v44 = vpop.permute.xlu0 %40  ;;  %v111_v9 = vpop.permute.xlu1 %110 }
  0x8b   :  { %vm43_vm0 = vcmp.eq.s32.totalorder %v18_v43, %v994_v44  ;;  %vm47_vm3 = vcmp.eq.s32.totalorder %v22_v46, %v994_v44  ;;  %vm42_vm8 = vcmp.eq.s32.totalorder %v991_v42, %v994_v44  ;;  %vm46_vm13 = vcmp.eq.s32.totalorder %v21_v49, %v994_v44 }
  0x8c   :  { %vm52_vm4 = vmor %vm31_vm2, %vm43_vm0  ;;  %vm45_vm2 = vcmp.eq.s32.totalorder %v20_v56, %v994_v44 }
  0x8d   :  { %vm73_vm6 = vmor %vm52_vm4, %vm64_vm1  ;;  %vm34_vm1 = vcmp.eq.s32.totalorder %v21_v49, %v989_v41  ;;  %vm66_vm4 = vcmp.eq.s32.totalorder %v20_v56, %v996_v45 }
  0x8e   :  { %744 = vmatprep.mubr.msk.f32.mxu1 %vm73_vm6, %v894_v52  ;;  %vm56_vm9 = vmor %vm35_vm7, %vm47_vm3  ;;  %vm33_vm6 = vcmp.eq.s32.totalorder %v20_v56, %v989_v41  ;;  %vm49_vm7 = vcmp.eq.s32.totalorder %v24_v61, %v994_v44 }
  0x8f   :  { %vm77_vm11 = vmor %vm56_vm9, %vm68_vm5  ;;  %vm70_vm9 = vcmp.eq.s32.totalorder %v24_v61, %v996_v45  ;;  %v142_v16 = vpop.permute.xlu1 %141  ;;  %v173_v21 = vpop.permute.xlu0 %172 }
  0x90   :  { %748 = vmatprep.mubr.msk.f32.mxu0 %vm77_vm11, %v894_v52  ;;  %vm51_vm14 = vmor %vm30_vm12, %vm42_vm8  ;;  %vm37_vm11 = vcmp.eq.s32.totalorder %v24_v61, %v989_v41 }
  0x91   :  { %vm72_vm0 = vmor %vm51_vm14, %vm63_vm10  ;;  %vm50_vm14 = vcmp.eq.s32.totalorder %v25_v3, %v994_v44 }
  0x92   :  { %745 = vmatmul.mubr.msk.f32.vlgmr.msra.gmra.mrb[0].mxu1 %vm72_vm0, %v894_v52  ;;  %vm55_vm3 = vmor %vm34_vm1, %vm46_vm13  ;;  %vm44_vm0 = vcmp.eq.s32.totalorder %v19_v6, %v994_v44  ;;  %vm71_vm1 = vcmp.eq.s32.totalorder %v25_v3, %v996_v45 }
  0x93   :  { %799 = vmatpush1.bf16.xpose.msra.mxu1 %v798_v55  ;;  %vm76_vm5 = vmor %vm55_vm3, %vm67_vm15  ;;  %vm38_vm15 = vcmp.eq.s32.totalorder %v25_v3, %v989_v41  ;;  %vm32_vm3 = vcmp.eq.s32.totalorder %v19_v6, %v989_v41  ;;  %v754_v55 = vld [vmem:[%s1135_s2 + $0x21] ss:$0 sm:$0xff] }
  0x94   :  { %749 = vmatmul.mubr.msk.f32.vlgmr.msra.gmra.mrb[0].mxu0 %vm76_vm5, %v894_v52  ;;  %vm54_vm8 = vmor %vm33_vm6, %vm45_vm2  ;;  %801 = vmatprep.subr.bf16.mxu1 %v800_v59  ;;  %vm65_vm6 = vcmp.eq.s32.totalorder %v19_v6, %v996_v45  ;;  %v204_v25 = vpop.permute.xlu1 %203 }
  0x95   :  { %815 = vmatpush1.bf16.xpose.msra.mxu0 %v814_v60  ;;  %vm75_vm10 = vmor %vm54_vm8, %vm66_vm4  ;;  %vm48_vm4 = vcmp.eq.s32.totalorder %v23_v7, %v994_v44  ;;  %vm36_vm8 = vcmp.eq.s32.totalorder %v23_v7, %v989_v41  ;;  %v752_v41 = vld [vmem:[%s1135_s2 + $0x20] ss:$0 sm:$0xff] }
  0x96   :  { %746 = vmatprep.mubr.msk.f32.mxu1 %vm75_vm10, %v894_v52  ;;  %vm58_vm12 = vmor %vm37_vm11, %vm49_vm7  ;;  %817 = vmatprep.subr.bf16.mxu0 %v816_v62  ;;  %vm69_vm11 = vcmp.eq.s32.totalorder %v23_v7, %v996_v45 }
  0x97   :  { %vm79_vm13 = vmor %vm58_vm12, %vm70_vm9  ;;  %vm107_vm9 = vcmp.eq.s32.totalorder %v25_v3, 1105 }
  0x98   :  { %750 = vmatprep.mubr.msk.f32.mxu0 %vm79_vm13, %v894_v52  ;;  %vm59_vm2 = vmor %vm38_vm15, %vm50_vm14  ;;  %v121_v15 = vsel %vm107_vm9, %v111_v9, 0.0  ;;  %vm897_vm14 = vmmov 0   ;;  %vm139_vm15 = vcmp.eq.s32.totalorder %v25_v3, 1106 }
  0x99   :  { %vm53_vm5 = vmor %vm32_vm3, %vm44_vm0  ;;  %v152_v20 = vsel %vm139_vm15, %v142_v16, 0.0  ;;  %vm170_vm0 = vcmp.eq.s32.totalorder %v25_v3, 1107 }
  0x9a   :  { %vm80_vm7 = vmor %vm59_vm2, %vm71_vm1  ;;  %v183_v24 = vsel %vm170_vm0, %v173_v21, 0.0  ;;  %vm201_vm1 = vcmp.eq.s32.totalorder %v25_v3, 1108  ;;  %vm622_vm2 = vcmask 261120  }
  0x9b   :  { %803 = vmatpush1.bf16.xpose.msra.mxu1 %v802_v4  ;;  %vm57_vm10 = vmor %vm36_vm8, %vm48_vm4  ;;  %v743_v14 = vsel %vm80_vm7, 1.0, %v896_v13  ;;  %v214_v27 = vsel %vm201_vm1, %v204_v25, 0.0 }
  0x9c   :  { %826 = vmatprep.subr.bf16.mxu1 %v895_v8  ;;  %vm74_vm12 = vmor %vm53_vm5, %vm65_vm6  ;;  %v130_v17 = vadd.f32 %v743_v14, %v121_v15 }
  0x9d   :  { %819 = vmatpush1.bf16.xpose.msra.mxu0 %v818_v5  ;;  %vm78_vm13 = vmor %vm57_vm10, %vm69_vm11 }
  0x9e   :  { %820 = vmatprep.subr.bf16.mxu0 %v895_v8  ;;  %v161_v23 = vadd.f32 %v152_v20, %v130_v17 }
  0xa0   :  { %v192_v26 = vadd.f32 %v183_v24, %v161_v23 }
  0xa2   :  { %747 = vmatmul.mubr.msk.f32.vlgmr.msra.gmra.mrb[0].mxu1 %vm74_vm12, %v894_v52  ;;  %v223_v28 = vadd.f32 %v214_v27, %v192_v26 }
  0xa3   :  { %785 = vmatprep.mubr.msk.f32.mxu1 %vm897_vm14, %v896_v13  ;;  %828 = vmatpush3.bf16.msra.mxu1 %v827_v31 }
  0xa4   :  { %751 = vmatmul.mubr.msk.f32.vlgmr.msra.gmra.mrb[0].mxu0 %vm78_vm13, %v894_v52  ;;  %829 = vmatprep.subr.bf16.mxu1 %v895_v8 }
  0xa5   :  { %822 = vmatpush3.bf16.xpose.msra.mxu0 %v821_v12  ;;  %774 = vmatprep.mubr.msk.f32.mxu0 %vm897_vm14, %v896_v13 }
  0xa6   :  { %823 = vmatprep.subr.bf16.mxu0 %v895_v8 }
  0xa7   :  { %831 = vmatpush3.bf16.msra.mxu1 %v830_v34 }
  0xad   :  { %825 = vmatpush3.bf16.xpose.msra.mxu0 %v824_v22 }
  0xb4   :  { %775 = vmatmul.mubr.f32.vlgmr.msra.gmra.mrb[0].mxu0 %v223_v28 }
 0x175   :  { %v396_v35 = vpop.f32.mrb[0].mxu1 }
 0x176   :  { %v398_v36 = vpop.f32.mrb[1].mxu1 }
 0x187   :  { %v606_v37 = vpop.f32.mrb[0].mxu0 }
 0x188   :  { %v832_v38 = vadd.f32 %v606_v37, %v396_v35  ;;  %v776_v39 = vpop.f32.mrb[1].mxu0 }
 0x18a   :  { %v610_v40 = vmax.f32 %v832_v38, 0.0 }
 0x18c   :  { %786 = vmatmul.mubr.msk.f32.vlgmr.msra.gmra.mrb[2].mxu1 %vm622_vm2, %v610_v40 }
 0x25f   :  { %v692_v42 = vpop.f32.mrb[2].mxu1 }
 0x260   :  { %v693_v43 = vadd.f32 %v752_v41, %v692_v42  ;;  %v787_v44 = vpop.f32.mrb[3].mxu1 }
 0x262   :  { %v696_v45 = vsel %vm622_vm2, %v693_v43, 0.0 }
 0x263   :  { %697 = vadd.xlane.f32.xlu1 %v696_v45 }
 0x2f0   :  { %v698_v46 = vpop.xlane.xlu1 %697 }
 0x2f1   :  { %v700_v47 = vmul.f32 0.03125, %v698_v46 }
 0x2f3   :  { %v701_v48 = vsub.f32 %v693_v43, %v700_v47 }
 0x2f5   :  { %v702_v49 = vmul.f32 %v701_v48, %v701_v48 }
 0x2f7   :  { %v703_v50 = vsel %vm622_vm2, %v702_v49, 0.0 }
 0x2f8   :  { %704 = vadd.xlane.f32.xlu0 %v703_v50 }
 0x385   :  { %v705_v51 = vpop.xlane.xlu0 %704 }
 0x386   :  { %v706_v52 = vmul.f32 0.03125, %v705_v51 }
 0x388   :  { %v707_v53 = vadd.f32 1e-05, %v706_v52 }
 0x38a   :  { %861 = vrsqrt.f32 %v707_v53 }
 0x394   :  { %v862_v54 = vpop.eup %861 }
 0x395   :  { %v709_v56 = vmul.f32 %v862_v54, %v701_v48 }
 0x397   :  { %v714_v58 = vmul.f32 %v754_v55, %v709_v56 }
 0x399   :  { %v719_v59 = vadd.f32 %v755_v57, %v714_v58 }
 0x39b   :  { %720 = vst.msk [vmem:[#allocation2] sm:$0xff] %vm622_vm2, %v719_v59 }
 0x39c   :  { %874 = shalt.err (!%p871_p4)
}
 0x39d   :  { %s875_s0 = scalar_lea.hbm %s1136_s3, 128 }
 0x39e   :  { %p876_p5 = scmp.ne.s32.totalorder %s1136_s3, %s875_s0  ;;  %p879_p6 = scmp.lt.u32.totalorder %s875_s0, %s1136_s3 }
 0x3a0   :  { %p881_p7 = pnand %p879_p6, %p876_p5 }
 0x3a2   :  { %884 = shalt.err (!%p881_p7)
}
 0x3a3   :  { %730 = dma.vmem_to_hbm [thread:$0]  %s728_s16, 128, %s1136_s3, [#allocation3]  }
 0x3a4   :  { %885 = dma.done.wait [#allocation3], 128  }
 0x3a5   :  { %886 = vsyncadd [#allocation3], 4294967168 }
 0x3a6   :  { %734 = vsyncpa [#allocation3], 1 }

</bundles_post_ra>
